<compile_context>
chip_gen: v6e
topology: v6e:2x2x1
jax: 0.10.0
libtpu: 0.0.40
codegen_flags: <defaults>
</compile_context>

<pallas_src>
import jax
import jax.numpy as jnp
from jax.experimental import pallas as pl
from jax.experimental.pallas import tpu as pltpu


def _decoder_seq_kernel(attn_ref, h1_ref, h2_init_ref, c2_init_ref,
                        w_all_ref, b_all_ref, w_fc_ref, b_fc_ref,
                        preds_ref, h2_out_ref, c2_out_ref,
                        x_slab, h_state, c_state):
    """One grid step = one decoder timestep.

    attn_ref   : [1, B, in_dim]     streamed per step
    h1_ref     : [1, B, H]          streamed per step
    h2/c2 init : [B, H]             loaded once (t == 0) into scratch
    w_all_ref  : [K_pad, 4H]        concat([W_ih, W_hh], 1).T zero-padded to K_pad
    w_fc_ref   : [H, out_dim]       weight-normed head weights
    preds_ref  : [1, B, out_dim]    streamed out per step
    h2/c2 out  : [B, H]             final recurrent state (written back once)
    x_slab     : [B, K_pad] scratch LHS slab  [attn | h1 | h2 | 0-pad]
    h_state/c_state : [B, H] scratch carrying the recurrence across steps
    """
    t = pl.program_id(0)
    H = h_state.shape[1]
    in_dim = attn_ref.shape[-1]

    @pl.when(t == 0)
    def _():
        # Zero the whole slab once: pad lanes (K >= in_dim + 2H) stay zero
        # forever, matching the zero-padded rows of w_all.
        x_slab[...] = jnp.zeros_like(x_slab)
        h_state[...] = h2_init_ref[...]
        c_state[...] = c2_init_ref[...]

    # Assemble the fused LHS with three static slice stores (no wrapper concat).
    x_slab[:, 0:in_dim] = attn_ref[0]
    x_slab[:, in_dim:in_dim + H] = h1_ref[0]
    x_slab[:, in_dim + H:in_dim + 2 * H] = h_state[...]

    # Single fused gate matmul: one K_pad x 4H MXU pass, f32 accumulation.
    gates = (
        jnp.dot(x_slab[...], w_all_ref[...], preferred_element_type=jnp.float32)
        + b_all_ref[...]
    )

    # Two whole-vreg EUP pushes; i/f/g/o are static lane slices of the results.
    sig_all = jax.nn.sigmoid(gates)
    tanh_all = jnp.tanh(gates)

    # PyTorch LSTMCell gate order: input, forget, cell(candidate), output.
    i_g = sig_all[:, 0 * H:1 * H]
    f_g = sig_all[:, 1 * H:2 * H]
    g_g = tanh_all[:, 2 * H:3 * H]
    o_g = sig_all[:, 3 * H:4 * H]

    c_new = f_g * c_state[...] + i_g * g_g
    h_new = o_g * jnp.tanh(c_new)

    # weight-normed Linear head (dropout is identity in inference mode).
    preds = (
        jnp.dot(h_new, w_fc_ref[...], preferred_element_type=jnp.float32)
        + b_fc_ref[...]
    )

    # Direct slice stores (no lane concatenation). State outputs have constant
    # block indices, so HBM writeback only happens after the final step.
    preds_ref[0] = preds
    h_state[...] = h_new
    c_state[...] = c_new
    h2_out_ref[...] = h_new
    c2_out_ref[...] = c_new


def prepare_decoder_params(params, *, k_pad_to=128):
    """One-time parameter preprocessing (hoisted out of the per-step path)."""
    w_ih = params["w_ih"]                      # [4H, in_dim + H]
    w_hh = params["w_hh"]                      # [4H, H]
    H = w_hh.shape[1]

    # Fused gate weights: gates = [attn | h1 | h2] @ W_all + b_all
    w_all = jnp.concatenate([w_ih, w_hh], axis=1).T          # [in_dim + 2H, 4H]
    k = w_all.shape[0]
    k_pad = pl.cdiv(k, k_pad_to) * k_pad_to
    w_all = jnp.pad(w_all, ((0, k_pad - k), (0, 0)))          # zero rows: MXU-tile K
    b_all = (params["b_ih"] + params["b_hh"]).reshape(1, 4 * H)

    # weight_norm(Linear): W = g * v / ||v|| (norm over input dim, per row).
    # No epsilon — matches PyTorch (NaN if an fc_v row is exactly zero).
    v = params["fc_v"]                                        # [out_dim, H]
    g = params["fc_g"]                                        # [out_dim, 1]
    w_fc = (g * v / jnp.linalg.norm(v, axis=1, keepdims=True)).T  # [H, out_dim]
    b_fc = params["fc_b"].reshape(1, -1)                      # [1, out_dim]

    return {"w_all": w_all, "b_all": b_all, "w_fc": w_fc, "b_fc": b_fc}


def language_decoder_forward_seq(weighted_attn, h1, h2, c2, prepared):
    """Run T decoder steps in one pallas_call (weights resident, state in scratch).

    weighted_attn : [T, B, in_dim]
    h1            : [T, B, H]       (td_hidden h per step)
    h2, c2        : [B, H]          initial lm_hidden state
    returns preds [T, B, out_dim], (h2_final, c2_final)
    """
    T, B, in_dim = weighted_attn.shape
    H = h2.shape[1]
    out_dim = prepared["w_fc"].shape[1]
    k_pad = prepared["w_all"].shape[0]

    grid_spec = pltpu.PrefetchScalarGridSpec(
        num_scalar_prefetch=0,
        grid=(T,),
        in_specs=[
            # Streamed per timestep.
            pl.BlockSpec((1, B, in_dim), lambda t: (t, 0, 0)),
            pl.BlockSpec((1, B, H), lambda t: (t, 0, 0)),
            # Initial state + weights: constant index_map -> DMA'd once,
            # resident in VMEM across all T steps.
            pl.BlockSpec((B, H), lambda t: (0, 0)),
            pl.BlockSpec((B, H), lambda t: (0, 0)),
            pl.BlockSpec((k_pad, 4 * H), lambda t: (0, 0)),
            pl.BlockSpec((1, 4 * H), lambda t: (0, 0)),
            pl.BlockSpec((H, out_dim), lambda t: (0, 0)),
            pl.BlockSpec((1, out_dim), lambda t: (0, 0)),
        ],
        out_specs=[
            pl.BlockSpec((1, B, out_dim), lambda t: (t, 0, 0)),
            pl.BlockSpec((B, H), lambda t: (0, 0)),
            pl.BlockSpec((B, H), lambda t: (0, 0)),
        ],
        scratch_shapes=[
            pltpu.VMEM((B, k_pad), jnp.float32),   # fused LHS slab
            pltpu.VMEM((B, H), jnp.float32),       # h2 carry
            pltpu.VMEM((B, H), jnp.float32),       # c2 carry
        ],
    )

    preds, h2_new, c2_new = pl.pallas_call(
        _decoder_seq_kernel,
        out_shape=(
            jax.ShapeDtypeStruct((T, B, out_dim), jnp.float32),
            jax.ShapeDtypeStruct((B, H), jnp.float32),
            jax.ShapeDtypeStruct((B, H), jnp.float32),
        ),
        grid_spec=grid_spec,
        compiler_params=pltpu.CompilerParams(
            dimension_semantics=("arbitrary",)),   # sequential recurrence axis
    )(weighted_attn, h1, h2, c2,
      prepared["w_all"], prepared["b_all"], prepared["w_fc"], prepared["b_fc"])

    return preds, (h2_new, c2_new)


def language_decoder_forward(weighted_attn, h1, h2, c2, prepared):
    """Single-step API matching the module's forward exactly (T == 1)."""
    preds, state = language_decoder_forward_seq(
        weighted_attn[None], h1[None], h2, c2, prepared)
    return preds[0], state


def _reference_forward_seq(weighted_attn, h1, h2, c2, params):
    """Pure-JAX reference (torch.nn.LSTMCell + weight_norm Linear, looped over T)."""
    H = h2.shape[1]
    v, g = params["fc_v"], params["fc_g"]
    w = g * v / jnp.linalg.norm(v, axis=1, keepdims=True)
    preds = []
    for t in range(weighted_attn.shape[0]):
        x = jnp.concatenate([weighted_attn[t], h1[t]], axis=1)
        gates = (x @ params["w_ih"].T + params["b_ih"]
                 + h2 @ params["w_hh"].T + params["b_hh"])
        i_g = jax.nn.sigmoid(gates[:, 0 * H:1 * H])
        f_g = jax.nn.sigmoid(gates[:, 1 * H:2 * H])
        g_g = jnp.tanh(gates[:, 2 * H:3 * H])
        o_g = jax.nn.sigmoid(gates[:, 3 * H:4 * H])
        c2 = f_g * c2 + i_g * g_g
        h2 = o_g * jnp.tanh(c2)
        preds.append(h2 @ w.T + params["fc_b"])
    return jnp.stack(preds), (h2, c2)


if __name__ == "__main__":
    # Small shapes consistent with the module's forward.
    # in_dim + 2H = 80 -> padded to one 128x128 MXU tile; out_dim = 64.
    T, B, IN_DIM, HIDDEN_DIM, OUT_DIM = 8, 8, 16, 32, 64
    FC_BIAS_INIT = 0.1

    key = jax.random.PRNGKey(0)
    ks = jax.random.split(key, 10)

    # Inputs: per-step weighted_attn and td_hidden h1, initial lm_hidden (h2, c2).
    weighted_attn = jax.random.normal(ks[0], (T, B, IN_DIM), jnp.float32)
    h1 = jax.random.normal(ks[1], (T, B, HIDDEN_DIM), jnp.float32)
    h2 = jax.random.normal(ks[2], (B, HIDDEN_DIM), jnp.float32)
    c2 = jax.random.normal(ks[3], (B, HIDDEN_DIM), jnp.float32)

    # Deterministic synthetic parameters (shapes from __init__).
    k_lstm = 1.0 / jnp.sqrt(HIDDEN_DIM)
    fc_v = jax.random.uniform(ks[4], (OUT_DIM, HIDDEN_DIM), jnp.float32, -0.1, 0.1)
    params = {
        "w_ih": jax.random.uniform(
            ks[5], (4 * HIDDEN_DIM, IN_DIM + HIDDEN_DIM), jnp.float32, -k_lstm, k_lstm),
        "w_hh": jax.random.uniform(
            ks[6], (4 * HIDDEN_DIM, HIDDEN_DIM), jnp.float32, -k_lstm, k_lstm),
        "b_ih": jax.random.uniform(ks[7], (4 * HIDDEN_DIM,), jnp.float32, -k_lstm, k_lstm),
        "b_hh": jax.random.uniform(ks[8], (4 * HIDDEN_DIM,), jnp.float32, -k_lstm, k_lstm),
        # weight_norm params: g initialized to ||v|| per output row (PyTorch default).
        "fc_v": fc_v,
        "fc_g": jnp.linalg.norm(fc_v, axis=1, keepdims=True),
        "fc_b": jnp.full((OUT_DIM,), FC_BIAS_INIT, jnp.float32),
    }

    # Hoisted, one-time weight preprocessing.
    prepared = prepare_decoder_params(params)

    # --- Fused multi-step decode (time loop inside the kernel) ---
    preds_seq, (h2_seq, c2_seq) = language_decoder_forward_seq(
        weighted_attn, h1, h2, c2, prepared)
    jax.block_until_ready((preds_seq, h2_seq, c2_seq))

    ref_preds_seq, (ref_h2, ref_c2) = _reference_forward_seq(
        weighted_attn, h1, h2, c2, params)
    assert preds_seq.shape == (T, B, OUT_DIM)
    assert jnp.allclose(preds_seq, ref_preds_seq, atol=1e-4, rtol=1e-4)
    assert jnp.allclose(h2_seq, ref_h2, atol=1e-4, rtol=1e-4)
    assert jnp.allclose(c2_seq, ref_c2, atol=1e-4, rtol=1e-4)

    # --- Single step: exactly the module's forward (T == 1) ---
    preds1, (h2_1, c2_1) = language_decoder_forward(
        weighted_attn[0], h1[0], h2, c2, prepared)
    jax.block_until_ready((preds1, h2_1, c2_1))
    ref_preds1, (ref_h2_1, ref_c2_1) = _reference_forward_seq(
        weighted_attn[:1], h1[:1], h2, c2, params)
    assert preds1.shape == (B, OUT_DIM)
    assert jnp.allclose(preds1, ref_preds1[0], atol=1e-4, rtol=1e-4)
    assert jnp.allclose(h2_1, ref_h2_1, atol=1e-5, rtol=1e-5)
    assert jnp.allclose(c2_1, ref_c2_1, atol=1e-5, rtol=1e-5)

    print("KERNEL_OK")
</pallas_src>

<mosaic_0001>
module attributes {stable_mosaic.version = 11 : i64} {
  func.func @_decoder_seq_kernel(%arg0: i32, %arg1: memref<1x8x16xf32, #tpu.memory_space<vmem>>, %arg2: memref<1x8x32xf32, #tpu.memory_space<vmem>>, %arg3: memref<8x32xf32, #tpu.memory_space<vmem>>, %arg4: memref<8x32xf32, #tpu.memory_space<vmem>>, %arg5: memref<128x128xf32, #tpu.memory_space<vmem>>, %arg6: memref<1x128xf32, #tpu.memory_space<vmem>>, %arg7: memref<32x64xf32, #tpu.memory_space<vmem>>, %arg8: memref<1x64xf32, #tpu.memory_space<vmem>>, %arg9: memref<1x8x64xf32, #tpu.memory_space<vmem>>, %arg10: memref<8x32xf32, #tpu.memory_space<vmem>>, %arg11: memref<8x32xf32, #tpu.memory_space<vmem>>, %arg12: memref<8x128xf32, #tpu.memory_space<vmem>>, %arg13: memref<8x32xf32, #tpu.memory_space<vmem>>, %arg14: memref<8x32xf32, #tpu.memory_space<vmem>>) attributes {dimension_semantics = [#tpu.dimension_semantics<arbitrary>], iteration_bounds = array<i64: 8>, scalar_prefetch = 0 : i64, scratch_operands = 3 : i64, tpu.core_type = #tpu.core_type<tc>, window_params = [{transform_indices = @transform_0, window_bounds = array<i64: 1, 8, 16>}, {transform_indices = @transform_1, window_bounds = array<i64: 1, 8, 32>}, {pipeline_mode = #tpu.pipeline_mode<synchronous>, transform_indices = @transform_2, window_bounds = array<i64: 8, 32>}, {pipeline_mode = #tpu.pipeline_mode<synchronous>, transform_indices = @transform_3, window_bounds = array<i64: 8, 32>}, {pipeline_mode = #tpu.pipeline_mode<synchronous>, transform_indices = @transform_4, window_bounds = array<i64: 128, 128>}, {pipeline_mode = #tpu.pipeline_mode<synchronous>, transform_indices = @transform_5, window_bounds = array<i64: 1, 128>}, {pipeline_mode = #tpu.pipeline_mode<synchronous>, transform_indices = @transform_6, window_bounds = array<i64: 32, 64>}, {pipeline_mode = #tpu.pipeline_mode<synchronous>, transform_indices = @transform_7, window_bounds = array<i64: 1, 64>}, {transform_indices = @transform_8, window_bounds = array<i64: 1, 8, 64>}, {pipeline_mode = #tpu.pipeline_mode<synchronous>, transform_indices = @transform_9, window_bounds = array<i64: 8, 32>}, {pipeline_mode = #tpu.pipeline_mode<synchronous>, transform_indices = @transform_10, window_bounds = array<i64: 8, 32>}]} {
    %c0_i32 = arith.constant 0 : i32
    %0 = arith.cmpi eq, %arg0, %c0_i32 : i32
    %1 = arith.extui %0 : i1 to i32
    %c0_i32_0 = arith.constant 0 : i32
    %2 = arith.cmpi ne, %1, %c0_i32_0 : i32
    scf.if %2 {
      %cst_37 = arith.constant 0.000000e+00 : f32
      %45 = vector.broadcast %cst_37 : f32 to vector<8x128xf32>
      %c0_38 = arith.constant 0 : index
      %c0_39 = arith.constant 0 : index
      %46 = vector.load %arg12[%c0_38, %c0_39] : memref<8x128xf32, #tpu.memory_space<vmem>>, vector<8x128xf32>
      tpu.vector_store %arg12[%c0_38, %c0_39], %45 {strides = array<i32>} : memref<8x128xf32, #tpu.memory_space<vmem>>, vector<8x128xf32>,
      %c0_40 = arith.constant 0 : index
      %c0_41 = arith.constant 0 : index
      %47 = vector.load %arg3[%c0_40, %c0_41] : memref<8x32xf32, #tpu.memory_space<vmem>>, vector<8x32xf32>
      %c0_42 = arith.constant 0 : index
      %c0_43 = arith.constant 0 : index
      %48 = vector.load %arg13[%c0_42, %c0_43] : memref<8x32xf32, #tpu.memory_space<vmem>>, vector<8x32xf32>
      tpu.vector_store %arg13[%c0_42, %c0_43], %47 {strides = array<i32>} : memref<8x32xf32, #tpu.memory_space<vmem>>, vector<8x32xf32>,
      %c0_44 = arith.constant 0 : index
      %c0_45 = arith.constant 0 : index
      %49 = vector.load %arg4[%c0_44, %c0_45] : memref<8x32xf32, #tpu.memory_space<vmem>>, vector<8x32xf32>
      %c0_46 = arith.constant 0 : index
      %c0_47 = arith.constant 0 : index
      %50 = vector.load %arg14[%c0_46, %c0_47] : memref<8x32xf32, #tpu.memory_space<vmem>>, vector<8x32xf32>
      tpu.vector_store %arg14[%c0_46, %c0_47], %49 {strides = array<i32>} : memref<8x32xf32, #tpu.memory_space<vmem>>, vector<8x32xf32>,
    } else {
    }
    %c0 = arith.constant 0 : index
    %c0_1 = arith.constant 0 : index
    %c0_2 = arith.constant 0 : index
    %3 = vector.load %arg1[%c0, %c0_1, %c0_2] : memref<1x8x16xf32, #tpu.memory_space<vmem>>, vector<1x8x16xf32>
    %4 = vector.shape_cast %3 : vector<1x8x16xf32> to vector<8x16xf32>
    %c0_3 = arith.constant 0 : index
    %c0_4 = arith.constant 0 : index
    %5 = vector.load %arg12[%c0_3, %c0_4] : memref<8x128xf32, #tpu.memory_space<vmem>>, vector<8x16xf32>
    tpu.vector_store %arg12[%c0_3, %c0_4], %4 {strides = array<i32>} : memref<8x128xf32, #tpu.memory_space<vmem>>, vector<8x16xf32>,
    %c0_5 = arith.constant 0 : index
    %c0_6 = arith.constant 0 : index
    %c0_7 = arith.constant 0 : index
    %6 = vector.load %arg2[%c0_5, %c0_6, %c0_7] : memref<1x8x32xf32, #tpu.memory_space<vmem>>, vector<1x8x32xf32>
    %7 = vector.shape_cast %6 : vector<1x8x32xf32> to vector<8x32xf32>
    %c0_8 = arith.constant 0 : index
    %c16 = arith.constant 16 : index
    %8 = vector.load %arg12[%c0_8, %c16] : memref<8x128xf32, #tpu.memory_space<vmem>>, vector<8x32xf32>
    tpu.vector_store %arg12[%c0_8, %c16], %7 {strides = array<i32>} : memref<8x128xf32, #tpu.memory_space<vmem>>, vector<8x32xf32>,
    %c0_9 = arith.constant 0 : index
    %c0_10 = arith.constant 0 : index
    %9 = vector.load %arg13[%c0_9, %c0_10] : memref<8x32xf32, #tpu.memory_space<vmem>>, vector<8x32xf32>
    %c0_11 = arith.constant 0 : index
    %c48 = arith.constant 48 : index
    %10 = vector.load %arg12[%c0_11, %c48] : memref<8x128xf32, #tpu.memory_space<vmem>>, vector<8x32xf32>
    tpu.vector_store %arg12[%c0_11, %c48], %9 {strides = array<i32>} : memref<8x128xf32, #tpu.memory_space<vmem>>, vector<8x32xf32>,
    %c0_12 = arith.constant 0 : index
    %c0_13 = arith.constant 0 : index
    %11 = vector.load %arg12[%c0_12, %c0_13] : memref<8x128xf32, #tpu.memory_space<vmem>>, vector<8x128xf32>
    %c0_14 = arith.constant 0 : index
    %c0_15 = arith.constant 0 : index
    %12 = vector.load %arg5[%c0_14, %c0_15] : memref<128x128xf32, #tpu.memory_space<vmem>>, vector<128x128xf32>
    %cst = arith.constant dense<0.000000e+00> : vector<8x128xf32>
    %13 = tpu.matmul %11, %12, %cst {dimension_numbers = #tpu.dot_dimension_numbers<[1], [0], [0], [1], [0, 0, 1, 1], [], []>} : vector<8x128xf32>, vector<128x128xf32>, vector<8x128xf32> -> vector<8x128xf32>
    %c0_16 = arith.constant 0 : index
    %c0_17 = arith.constant 0 : index
    %14 = vector.load %arg6[%c0_16, %c0_17] : memref<1x128xf32, #tpu.memory_space<vmem>>, vector<1x128xf32>
    %15 = vector.broadcast %14 : vector<1x128xf32> to vector<8x128xf32>
    %16 = arith.addf %13, %15 : vector<8x128xf32>
    %17 = arith.negf %16 : vector<8x128xf32>
    %18 = math.exp %17 : vector<8x128xf32>
    %cst_18 = arith.constant 1.000000e+00 : f32
    %19 = vector.broadcast %cst_18 : f32 to vector<8x128xf32>
    %20 = arith.addf %19, %18 : vector<8x128xf32>
    %21 = arith.divf %19, %20 : vector<8x128xf32>
    %22 = math.tanh %16 : vector<8x128xf32>
    %23 = vector.extract_strided_slice %21 {offsets = [0, 0], sizes = [8, 32], strides = [1, 1]} : vector<8x128xf32> to vector<8x32xf32>
    %24 = vector.extract_strided_slice %21 {offsets = [0, 32], sizes = [8, 32], strides = [1, 1]} : vector<8x128xf32> to vector<8x32xf32>
    %25 = vector.extract_strided_slice %22 {offsets = [0, 64], sizes = [8, 32], strides = [1, 1]} : vector<8x128xf32> to vector<8x32xf32>
    %26 = vector.extract_strided_slice %21 {offsets = [0, 96], sizes = [8, 32], strides = [1, 1]} : vector<8x128xf32> to vector<8x32xf32>
    %c0_19 = arith.constant 0 : index
    %c0_20 = arith.constant 0 : index
    %27 = vector.load %arg14[%c0_19, %c0_20] : memref<8x32xf32, #tpu.memory_space<vmem>>, vector<8x32xf32>
    %28 = arith.mulf %24, %27 : vector<8x32xf32>
    %29 = arith.mulf %23, %25 : vector<8x32xf32>
    %30 = arith.addf %28, %29 : vector<8x32xf32>
    %31 = math.tanh %30 : vector<8x32xf32>
    %32 = arith.mulf %26, %31 : vector<8x32xf32>
    %c0_21 = arith.constant 0 : index
    %c0_22 = arith.constant 0 : index
    %33 = vector.load %arg7[%c0_21, %c0_22] : memref<32x64xf32, #tpu.memory_space<vmem>>, vector<32x64xf32>
    %cst_23 = arith.constant dense<0.000000e+00> : vector<8x64xf32>
    %34 = tpu.matmul %32, %33, %cst_23 {dimension_numbers = #tpu.dot_dimension_numbers<[1], [0], [0], [1], [0, 0, 1, 1], [], []>} : vector<8x32xf32>, vector<32x64xf32>, vector<8x64xf32> -> vector<8x64xf32>
    %c0_24 = arith.constant 0 : index
    %c0_25 = arith.constant 0 : index
    %35 = vector.load %arg8[%c0_24, %c0_25] : memref<1x64xf32, #tpu.memory_space<vmem>>, vector<1x64xf32>
    %36 = vector.broadcast %35 : vector<1x64xf32> to vector<8x64xf32>
    %37 = arith.addf %34, %36 : vector<8x64xf32>
    %c0_26 = arith.constant 0 : index
    %c0_27 = arith.constant 0 : index
    %c0_28 = arith.constant 0 : index
    %38 = vector.load %arg9[%c0_26, %c0_27, %c0_28] : memref<1x8x64xf32, #tpu.memory_space<vmem>>, vector<1x8x64xf32>
    %39 = vector.shape_cast %38 : vector<1x8x64xf32> to vector<8x64xf32>
    %40 = vector.shape_cast %37 : vector<8x64xf32> to vector<1x8x64xf32>
    tpu.vector_store %arg9[%c0_26, %c0_27, %c0_28], %40 {strides = array<i32>} : memref<1x8x64xf32, #tpu.memory_space<vmem>>, vector<1x8x64xf32>,
    %c0_29 = arith.constant 0 : index
    %c0_30 = arith.constant 0 : index
    %41 = vector.load %arg13[%c0_29, %c0_30] : memref<8x32xf32, #tpu.memory_space<vmem>>, vector<8x32xf32>
    tpu.vector_store %arg13[%c0_29, %c0_30], %32 {strides = array<i32>} : memref<8x32xf32, #tpu.memory_space<vmem>>, vector<8x32xf32>,
    %c0_31 = arith.constant 0 : index
    %c0_32 = arith.constant 0 : index
    %42 = vector.load %arg14[%c0_31, %c0_32] : memref<8x32xf32, #tpu.memory_space<vmem>>, vector<8x32xf32>
    tpu.vector_store %arg14[%c0_31, %c0_32], %30 {strides = array<i32>} : memref<8x32xf32, #tpu.memory_space<vmem>>, vector<8x32xf32>,
    %c0_33 = arith.constant 0 : index
    %c0_34 = arith.constant 0 : index
    %43 = vector.load %arg10[%c0_33, %c0_34] : memref<8x32xf32, #tpu.memory_space<vmem>>, vector<8x32xf32>
    tpu.vector_store %arg10[%c0_33, %c0_34], %32 {strides = array<i32>} : memref<8x32xf32, #tpu.memory_space<vmem>>, vector<8x32xf32>,
    %c0_35 = arith.constant 0 : index
    %c0_36 = arith.constant 0 : index
    %44 = vector.load %arg11[%c0_35, %c0_36] : memref<8x32xf32, #tpu.memory_space<vmem>>, vector<8x32xf32>
    tpu.vector_store %arg11[%c0_35, %c0_36], %30 {strides = array<i32>} : memref<8x32xf32, #tpu.memory_space<vmem>>, vector<8x32xf32>,
    return
  }
  func.func @transform_0(%arg0: i32) -> (i32, i32, i32) {
    %c0_i32 = arith.constant 0 : i32
    %c0_i32_0 = arith.constant 0 : i32
    %c0_i32_1 = arith.constant 0 : i32
    return %arg0, %c0_i32, %c0_i32_0 : i32, i32, i32
  }
  func.func @transform_1(%arg0: i32) -> (i32, i32, i32) {
    %c0_i32 = arith.constant 0 : i32
    %c0_i32_0 = arith.constant 0 : i32
    %c0_i32_1 = arith.constant 0 : i32
    return %arg0, %c0_i32, %c0_i32_0 : i32, i32, i32
  }
  func.func @transform_2(%arg0: i32) -> (i32, i32) {
    %c0_i32 = arith.constant 0 : i32
    %c0_i32_0 = arith.constant 0 : i32
    %c0_i32_1 = arith.constant 0 : i32
    return %c0_i32, %c0_i32_0 : i32, i32
  }
  func.func @transform_3(%arg0: i32) -> (i32, i32) {
    %c0_i32 = arith.constant 0 : i32
    %c0_i32_0 = arith.constant 0 : i32
    %c0_i32_1 = arith.constant 0 : i32
    return %c0_i32, %c0_i32_0 : i32, i32
  }
  func.func @transform_4(%arg0: i32) -> (i32, i32) {
    %c0_i32 = arith.constant 0 : i32
    %c0_i32_0 = arith.constant 0 : i32
    %c0_i32_1 = arith.constant 0 : i32
    return %c0_i32, %c0_i32_0 : i32, i32
  }
  func.func @transform_5(%arg0: i32) -> (i32, i32) {
    %c0_i32 = arith.constant 0 : i32
    %c0_i32_0 = arith.constant 0 : i32
    %c0_i32_1 = arith.constant 0 : i32
    return %c0_i32, %c0_i32_0 : i32, i32
  }
  func.func @transform_6(%arg0: i32) -> (i32, i32) {
    %c0_i32 = arith.constant 0 : i32
    %c0_i32_0 = arith.constant 0 : i32
    %c0_i32_1 = arith.constant 0 : i32
    return %c0_i32, %c0_i32_0 : i32, i32
  }
  func.func @transform_7(%arg0: i32) -> (i32, i32) {
    %c0_i32 = arith.constant 0 : i32
    %c0_i32_0 = arith.constant 0 : i32
    %c0_i32_1 = arith.constant 0 : i32
    return %c0_i32, %c0_i32_0 : i32, i32
  }
  func.func @transform_8(%arg0: i32) -> (i32, i32, i32) {
    %c0_i32 = arith.constant 0 : i32
    %c0_i32_0 = arith.constant 0 : i32
    %c0_i32_1 = arith.constant 0 : i32
    return %arg0, %c0_i32, %c0_i32_0 : i32, i32, i32
  }
  func.func @transform_9(%arg0: i32) -> (i32, i32) {
    %c0_i32 = arith.constant 0 : i32
    %c0_i32_0 = arith.constant 0 : i32
    %c0_i32_1 = arith.constant 0 : i32
    return %c0_i32, %c0_i32_0 : i32, i32
  }
  func.func @transform_10(%arg0: i32) -> (i32, i32) {
    %c0_i32 = arith.constant 0 : i32
    %c0_i32_0 = arith.constant 0 : i32
    %c0_i32_1 = arith.constant 0 : i32
    return %c0_i32, %c0_i32_0 : i32, i32
  }
}

</mosaic_0001>

<bundles_post_ra>
// kernel: tpu_custom_call.1
= control target key start
LH: loop header
LB: loop body
LE: loop exit
PB: predicated region body
PF: predicated region fallthrough
CT: control target
= control target key end

     0   :  { %s1808_s0 = inlined_call_operand.hbm [shape: f32[8,8,16], index: 0, kind: input, shape index: {}]   ;;  %s1809_s1 = inlined_call_operand.hbm [shape: f32[8,8,32], index: 1, kind: input, shape index: {}]   ;;  %s1810_s2 = inlined_call_operand.hbm [shape: f32[8,32], index: 2, kind: input, shape index: {}]   ;;  %s1811_s3 = inlined_call_operand.hbm [shape: f32[8,32], index: 3, kind: input, shape index: {}]   ;;  %s1812_s4 = inlined_call_operand.hbm [shape: f32[128,128], index: 4, kind: input, shape index: {}]   ;;  %s1813_s5 = inlined_call_operand.vmem [shape: f32[1,128], index: 5, kind: input, shape index: {}]   ;;  %s1814_s6 = inlined_call_operand.hbm [shape: f32[32,64], index: 6, kind: input, shape index: {}]   ;;  %s1815_s7 = inlined_call_operand.vmem [shape: f32[1,64], index: 7, kind: input, shape index: {}]   ;;  %s1816_s8 = inlined_call_operand.hbm [shape: f32[8,8,64], index: 8, kind: output, shape index: {0}]   ;;  %s1817_s9 = inlined_call_operand.hbm [shape: f32[8,32], index: 9, kind: output, shape index: {1}]   ;;  %s1818_s10 = inlined_call_operand.hbm [shape: f32[8,32], index: 10, kind: output, shape index: {2}]  }
   0x1   :  { %1827 = sst [smem:[#allocation30_spill]] %s1810_s2 }
   0x2   :  { %1828 = sst [smem:[#allocation31_spill]] %s1811_s3 }
   0x3   :  { %1829 = sst [smem:[#allocation32_spill]] %s1812_s4 }
   0x4   :  { %1830 = sst [smem:[#allocation33_spill]] %s1814_s6 }
   0x5   :  { %16 = vsyncpa [#allocation6], 0 }
   0x6   :  { %18 = vsyncpa [#allocation6 + $0x1], 0 }
   0x7   :  { %19 = vsyncpa [#allocation9], 0 }
   0x8   :  { %21 = vsyncpa [#allocation9 + $0x1], 0 }
   0x9   :  { %22 = vsyncpa [#allocation12], 0 }
   0xa   :  { %23 = vsyncpa [#allocation15], 0 }
   0xb   :  { %24 = vsyncpa [#allocation7], 0 }
   0xc   :  { %26 = vsyncpa [#allocation7 + $0x1], 0 }
   0xd   :  { %27 = vsyncpa [#allocation18], 0  ;;  %s1490_s13 = smov 0   ;;  %s1492_s14 = smov 0  }
   0xe   :  { %s1494_s15 = smov 0   ;;  %s1496_s16 = smov 0  }
   0xf LB: > { %1831 = sst [smem:[#allocation27_spill]] %s1410_s15  ;;  %s1416_s17 = smov [#allocation10]   ;;  %s1414_s16 = sphi %s1496_s16, %s1863_s16   ;;  %s1410_s15 = sphi %s1494_s15, %s1865_s15   ;;  %s1406_s14 = sphi %s1492_s14, %s1867_s14   ;;  %s1402_s13 = sphi %s1490_s13, %s1866_s13  }
  0x10   : > { %s297_s18 = sshll.u32 %s1416_s17, 4  ;;  %s1511_s19 = sadd.s32 4294967295, %s1414_s16   ;;  %s298_s18 = int_to_ptr.vmem [resolvable:$true] %s297_s18 }
  0x11   : > { %p899_p0 = scmp.ge.s32.totalorder %s1414_s16, 1  ;;  %p1819_p1 = scmp.eq.s32.totalorder %s1511_s19, 0 }
  0x12   : > { %p284_p2 = scmp.lt.s32.totalorder %s1414_s16, 9  ;;  %s1417_s21 = smov [#allocation11]  }
  0x13   : > { %s308_s22 = sshll.u32 %s1417_s21, 4  ;;  %s1418_s23 = smov [#allocation13]   ;;  %s309_s22 = int_to_ptr.vmem [resolvable:$true] %s308_s22 }
  0x14   : > { %p1517_p4 = pnand %p899_p0, %p284_p2  ;;  %s318_s24 = sshll.u32 %s1418_s23, 4  ;;  %s1529_s24 = int_to_ptr.vmem [resolvable:$true] %s318_s24 }
  0x15   : > { %s1133_s26 = scalar_lea.vmem %s298_s18, 128  ;;  %p1141_p11 = scmp.lt.s32.totalorder %s298_s18, %s298_s18 }
  0x16   : > { %s1832_s20 = scalar_select %p1517_p4, 1, 0 }
  0x17   : > { %p1028_p5 = pneg %p1517_p4  ;;  %p1134_p8 = scmp.ne.s32.totalorder %s298_s18, %s1133_s26 }
  0x18   : > { %p1142_p12 = scmp.lt.s32.totalorder %s1133_s26, %s1133_s26 }
  0x19   : > { %p1525_p6 = pnand %p1028_p5, %p1819_p1 }
  0x1a   : > { %p1143_p13 = por %p1142_p12, %p1141_p11 }
  0x1b   : > { %p1124_p7 = pneg %p1525_p6 }
  0x1d   : > { %p1136_p9 = pnand %p1134_p8, %p1124_p7 }
  0x1f   : > { %p1137_p10 = pneg %p1136_p9 }
  0x21   : > { %p1144_p0 = pnand %p1143_p13, %p1137_p10 }
  0x23   : > { %1147 = shalt.err (!%p1144_p0)
}
  0x24   : > { %s1834_s2 = sld [smem:[#allocation30_spill]]  ;;  %s1159_s29 = scalar_lea.vmem %s309_s22, 128 }
  0x25   : > { %p1160_p2 = scmp.ne.s32.totalorder %s309_s22, %s1159_s29  ;;  %p1167_p8 = scmp.lt.s32.totalorder %s309_s22, %s309_s22 }
  0x26   : > { %p1168_p9 = scmp.lt.s32.totalorder %s1159_s29, %s1159_s29 }
  0x27   : > { %p1162_p5 = pnand %p1160_p2, %p1124_p7 }
  0x28   : > { %p1169_p1 = por %p1168_p9, %p1167_p8 }
  0x29   : > { %p1163_p3 = pneg %p1162_p5 }
  0x2a   : > { %1031 = dma.hbm_to_vmem [thread:$0]  (!%p1525_p6), %s1834_s2, 128, %s298_s18, [#allocation9]  }
  0x2b   : > { %p1170_p4 = pnand %p1169_p1, %p1163_p3 }
  0x2d   : > { %1173 = shalt.err (!%p1170_p4)
}
  0x2e   : > { %s1835_s3 = sld [smem:[#allocation31_spill]]  ;;  %s1185_s12 = scalar_lea.vmem %s1529_s24, 2048 }
  0x2f   : > { %p1186_p10 = scmp.ne.s32.totalorder %s1529_s24, %s1185_s12  ;;  %p1193_p13 = scmp.lt.s32.totalorder %s1529_s24, %s1529_s24 }
  0x30   : > { %p1194_p1 = scmp.lt.s32.totalorder %s1185_s12, %s1185_s12 }
  0x31   : > { %p1188_p11 = pnand %p1186_p10, %p1124_p7 }
  0x32   : > { %p1195_p3 = por %p1194_p1, %p1193_p13 }
  0x33   : > { %p1189_p12 = pneg %p1188_p11 }
  0x34   : > { %1034 = dma.hbm_to_vmem [thread:$0]  (!%p1525_p6), %s1835_s3, 128, %s309_s22, [#allocation12]  }
  0x35   : > { %p1196_p4 = pnand %p1195_p3, %p1189_p12 }
  0x37   : > { %1199 = shalt.err (!%p1196_p4)
}
  0x38   : > { %s1419_s17 = smov 128   ;;  %s1420_s18 = smov 8  }
  0x39   : > { %s1836_s4 = sld [smem:[#allocation32_spill]]  ;;  %s1421_s23 = smov [#allocation14]  }
  0x3a   : > { %s334_s26 = sshll.u32 %s1421_s23, 4  ;;  %s335_s26 = int_to_ptr.vmem [resolvable:$true] %s334_s26 }
  0x3b   : > { %s1211_s27 = scalar_lea.vmem %s335_s26, 512  ;;  %p1219_p8 = scmp.lt.s32.totalorder %s335_s26, %s335_s26 }
  0x3c   : > { %p1212_p0 = scmp.ne.s32.totalorder %s335_s26, %s1211_s27  ;;  %p1220_p9 = scmp.lt.s32.totalorder %s1211_s27, %s1211_s27 }
  0x3e   : > { %p1214_p2 = pnand %p1212_p0, %p1124_p7  ;;  %p1221_p10 = por %p1220_p9, %p1219_p8 }
  0x3f   : > { %1037 = dma.hbm_to_vmem [thread:$0]  (!%p1525_p6), %s1836_s4, 2048, %s1529_s24, [#allocation12], %s1419_s17, %s1419_s17, %s1420_s18  }
  0x40   : > { %p1215_p5 = pneg %p1214_p2 }
  0x42   : > { %p1222_p11 = pnand %p1221_p10, %p1215_p5 }
  0x44   : > { %1225 = shalt.err (!%p1222_p11)
}
  0x45   : > { %s1837_s6 = sld [smem:[#allocation33_spill]]  ;;  %s898_s24 = sadd.s32 4294967294, %s1414_s16  }
  0x46   : > { %s1572_s25 = sadd.s32 1, %s1414_s16   ;;  %s40_s11 = sadd.s32 1, %s1410_s15 }
  0x47   : > { %1838 = sst [smem:[#allocation28_spill]] %s1572_s25  ;;  %s37_s30 = ssub.s32 %s1414_s16, %s1572_s25 }
  0x48   : > { %p38_p7 = scmp.eq.s32.totalorder %s37_s30, 0  ;;  %p47_p12 = scmp.ne.s32.totalorder %s1410_s15, %s1406_s14 }
  0x49   : > { %p48_p13 = scmp.eq.s32.totalorder %s1414_s16, 0  ;;  %p53_p1 = scmp.ne.s32.totalorder %s1406_s14, %s1402_s13 }
  0x4a   : > { %s1583_s12 = scalar_select %p38_p7, %s1410_s15, %s40_s11  }
  0x4b   : > { %1040 = dma.hbm_to_vmem [thread:$0]  (!%p1525_p6), %s1837_s6, 512, %s335_s26, [#allocation15], %s1419_s17, %s1419_s17, %s1420_s18  }
  0x4c   : > { %1839 = sst [smem:[#allocation29_spill]] %s1583_s12  ;;  %p1585_p3 = por %p48_p13, %p47_p12 }
  0x4d   : > { %p1841_p4 = scmp.eq.s32.totalorder %s1511_s19, 0  ;;  %p1824_p0 = scmp.eq.s32.totalorder %s1511_s19, 7 }
  0x4e   : > { %p235_p2 = scmp.eq.s32.totalorder %s898_s24, 7  ;;  %p1056_p5 = scmp.lt.s32.totalorder %s1414_s16, 8 }
  0x4f   : > { %p1591_p6 = por %p1841_p4, %p53_p1  ;;  %s351_s18 = sand.u32 1, %s1410_s15  }
  0x50   : > { %p1600_p8 = por %p1824_p0, %p47_p12  ;;  %p1604_p9 = por %p235_p2, %p53_p1 }
  0x51   : > { %s1842_s17 = scalar_select %p1591_p6, 1, 0 }
  0x52   : > { %s1843_s22 = scalar_select %p1600_p8, 1, 0 }
  0x53   : > { %s1844_s23 = scalar_select %p1604_p9, 1, 0 }
  0x54   : > { %s1608_s26 = sshll.u32 %s351_s18, 3  ;;  %s906_s27 = sshll.u32 %s1414_s16, 7 }
  0x55   : > { %s1614_s30 = scalar_lea.hbm %s1808_s0, %s906_s27  ;;  %s355_s24 = scalar_lea.vmem [#allocation5], %s1608_s26 }
  0x56   : > { %s362_s11 = sshll.u32 %s355_s24, 4  ;;  %p1621_p10 = pnand %p1056_p5, %p1585_p3  ;;  %s1617_s11 = int_to_ptr.vmem [resolvable:$true] %s362_s11 }
  0x57   : > { %s1628_s28 = scalar_lea.hbm %s1809_s1, %s906_s27  ;;  %s369_s29 = sand.u32 1, %s1414_s16  }
  0x58   : > { %s352_s6 = scalar_lea.sflag [#allocation6], %s351_s18  ;;  %s1226_s12 = scalar_lea.hbm %s1614_s30, 128 }
  0x59   : > { %p1227_p11 = scmp.ne.s32.totalorder %s1614_s30, %s1226_s12  ;;  %p1228_p7 = pneg %p1621_p10 }
  0x5a   : > { %s1231_s15 = scalar_lea.hbm %s1808_s0, 1024  ;;  %p1232_p1 = scmp.lt.s32.totalorder %s1614_s30, %s1808_s0 }
  0x5b   : > { %p1229_p12 = pnand %p1228_p7, %p1227_p11  ;;  %p1233_p3 = scmp.lt.s32.totalorder %s1231_s15, %s1226_s12 }
  0x5d   : > { %p1230_p13 = pneg %p1229_p12  ;;  %p1234_p4 = por %p1233_p3, %p1232_p1 }
  0x5f   : > { %p1235_p2 = pnand %p1234_p4, %p1230_p13 }
  0x61   : > { %1238 = shalt.err (!%p1235_p2)
}
  0x62   : > { %s1239_s4 = scalar_lea.vmem %s1617_s11, 128  ;;  %s1422_s18 = smov [#allocation5]  }
  0x63   : > { %p1240_p5 = scmp.ne.s32.totalorder %s1617_s11, %s1239_s4  ;;  %s1244_s27 = sshll.u32 %s1422_s18, 4  ;;  %s1245_s27 = int_to_ptr.vmem [resolvable:$false] %s1244_s27 }
  0x64   : > { %s1246_s21 = scalar_lea.vmem %s1245_s27, 256  ;;  %p1247_p0 = scmp.lt.s32.totalorder %s1617_s11, %s1245_s27 }
  0x65   : > { %p1242_p11 = pnand %p1240_p5, %p1228_p7  ;;  %p1248_p9 = scmp.lt.s32.totalorder %s1246_s21, %s1239_s4 }
  0x67   : > { %p1243_p12 = pneg %p1242_p11  ;;  %p1249_p8 = por %p1248_p9, %p1247_p0 }
  0x69   : > { %p1250_p1 = pnand %p1249_p8, %p1243_p12 }
  0x6b   : > { %1253 = shalt.err (!%p1250_p1)
}
  0x6c   : > { %1044 = dma.hbm_to_vmem [thread:$0]  (!%p1621_p10), %s1614_s30, 128, %s1617_s11, %s352_s6  }
  0x6d   : > { %s373_s15 = scalar_lea.vmem [#allocation8], %s1608_s26  ;;  %s370_s12 = scalar_lea.sflag [#allocation9], %s369_s29 }
  0x6e   : > { %s380_s25 = sshll.u32 %s373_s15, 4  ;;  %s1254_s24 = scalar_lea.hbm %s1628_s28, 128  ;;  %s381_s25 = int_to_ptr.vmem [resolvable:$true] %s380_s25 }
  0x6f   : > { %p1255_p0 = scmp.ne.s32.totalorder %s1628_s28, %s1254_s24  ;;  %s1259_s18 = scalar_lea.hbm %s1809_s1, 1024 }
  0x70   : > { %p1260_p13 = scmp.lt.s32.totalorder %s1628_s28, %s1809_s1  ;;  %p1261_p3 = scmp.lt.s32.totalorder %s1259_s18, %s1254_s24 }
  0x71   : > { %p1257_p8 = pnand %p1255_p0, %p1228_p7 }
  0x72   : > { %p1262_p4 = por %p1261_p3, %p1260_p13 }
  0x73   : > { %p1258_p9 = pneg %p1257_p8 }
  0x75   : > { %p1263_p2 = pnand %p1262_p4, %p1258_p9 }
  0x77   : > { %1266 = shalt.err (!%p1263_p2)
}
  0x78   : > { %s1267_s6 = scalar_lea.vmem %s381_s25, 128  ;;  %s1423_s26 = smov [#allocation8]  }
  0x79   : > { %p1268_p5 = scmp.ne.s32.totalorder %s381_s25, %s1267_s6  ;;  %s1272_s30 = sshll.u32 %s1423_s26, 4  ;;  %s1273_s30 = int_to_ptr.vmem [resolvable:$false] %s1272_s30 }
  0x7a   : > { %s1274_s11 = scalar_lea.vmem %s1273_s30, 256  ;;  %p1275_p1 = scmp.lt.s32.totalorder %s381_s25, %s1273_s30 }
  0x7b   : > { %p1270_p11 = pnand %p1268_p5, %p1228_p7  ;;  %p1276_p0 = scmp.lt.s32.totalorder %s1274_s11, %s1267_s6 }
  0x7d   : > { %p1271_p12 = pneg %p1270_p11  ;;  %p1277_p8 = por %p1276_p0, %p1275_p1 }
  0x7f   : > { %p1278_p6 = pnand %p1277_p8, %p1271_p12 }
  0x81   : > { %1281 = shalt.err (!%p1278_p6)
}
  0x82   : > { %1047 = dma.hbm_to_vmem [thread:$0]  (!%p1621_p10), %s1628_s28, 128, %s381_s25, %s370_s12  }
  0x83   : > { %p1846_p9 = scmp.ne.s32.totalorder %s1832_s20, 0 }
  0x84   : > { %s1679_s29 = sand.u32 (!%p1846_p9), 1, %s1406_s14   ;;  %p1847_p7 = scmp.ne.s32.totalorder (!%p1846_p9), %s1842_s17, 0 }
  0x85   : > { %389 = sbr.rel (%p1846_p9) target bundleno = 1193 (0x4a9), region = 52  ;;  %s1682_s15 = sshll.u32 (!%p1846_p9), %s1679_s29, 3 }
  0x86   : > { %s392_s24 = scalar_lea.sflag (!%p1846_p9), [#allocation6], %s1679_s29  ;;  %s395_s3 = scalar_lea.vmem (!%p1846_p9), [#allocation5], %s1682_s15 }
  0x8a   : > { %1373 = dma.done.wait (%p1847_p7), %s392_s24, 128  }
  0x8b   : > { %1375 = vsyncadd (%p1847_p7), %s392_s24, 4294967168  ;;  %s400_s2 = sand.u32 1, %s1511_s19   ;;  %s404_s28 = scalar_lea.vmem [#allocation8], %s1682_s15 }
  0x8c   : > { %s401_s20 = scalar_lea.sflag [#allocation9], %s400_s2 }
  0x8d   : > { %1377 = dma.done.wait (%p1847_p7), %s401_s20, 128  }
  0x8e   : > { %1379 = vsyncadd (%p1847_p7), %s401_s20, 4294967168  ;;  %p1848_p6 = scmp.eq.s32.totalorder %s1511_s19, 0 }
  0x90   : > { %1381 = dma.done.wait (%p1848_p6), [#allocation9], 128   ;;  %p1849_p10 = pmov %p1848_p6 }
  0x91   : > { %p1850_p13 = pmov %p1848_p6 }
  0x92   : > { %1383 = vsyncadd (%p1849_p10), [#allocation9], 4294967168 }
  0x93   : > { %1385 = dma.done.wait (%p1850_p13), [#allocation12], 2176   ;;  %p1851_p3 = pmov %p1848_p6 }
  0x95   : > { %1387 = vsyncadd (%p1851_p3), [#allocation12], 4294965120  ;;  %p1852_p4 = pmov %p1851_p3 }
  0x96   : > { %p1853_p2 = pmov %p1851_p3 }
  0x97   : > { %1389 = dma.done.wait (%p1852_p4), [#allocation15], 512  }
  0x98   : > { %1391 = vsyncadd (%p1853_p2), [#allocation15], 4294966784  ;;  %s457_s17 = scalar_lea.vmem [#allocation16], %s1682_s15  ;;  %p1854_p5 = scmp.ne.s32.totalorder %s1511_s19, 0 }
  0x9a   : > { %465 = sbr.rel (%p1854_p5) target bundleno = 162 (0xa2), region = 80 }
  0x9f   : > { %v467_v0 = vld [vmem:[#allocation10] sm:$0xff]  ;;  %vm468_vm0 = vcmask 261120   ;;  %v470_v1 = vld [vmem:[#allocation11] sm:$0xff]  ;;  %v1424_v2 = vmov 0.0  }
  0xa0   : > { %466 = vst [vmem:[#allocation2] sm:$0xff] %v1424_v2  ;;  %469 = vst.msk [vmem:[#allocation3] sm:$0xff] %vm468_vm0, %v467_v0 }
  0xa1   : > { %471 = vst.msk [vmem:[#allocation4] sm:$0xff] %vm468_vm0, %v470_v1 }
  0xa2 PF: > { %v475_v3 = vld [vmem:[%s404_s28] sm:$0xff]  ;;  %v505_v4 = vld [vmem:[#allocation13 + $0x78] sm:$0xff]  ;;  %s1425_s25 = smov 16   ;;  %v1426_v5 = vmov 0.0   ;;  %v504_v6 = vld [vmem:[#allocation13 + $0x70] sm:$0xff]  ;;  %vm473_vm1 = vcmask 130048  }
  0xa3   : > { %477 = vrot.lane.b32.xlu0 %v475_v3, %s1425_s25  ;;  %952 = vmatprep.subr.mxu0 %v1426_v5  ;;  %v503_v8 = vld [vmem:[#allocation13 + $0x68] sm:$0xff]  ;;  %vm1427_vm2 = vmmov 0   ;;  %v472_v9 = vld [vmem:[%s395_s3] sm:$0xff]  ;;  %s1428_s12 = smov 48   ;;  %v502_v10 = vld [vmem:[#allocation13 + $0x60] sm:$0xff]  ;;  %vm480_vm3 = vcmask 392320  }
  0xa4   : > { %953 = vmatpush3.msra.mxu0 %v505_v4  ;;  %987 = vmatprep.subr.mxu1 %v1426_v5  ;;  %474 = vst.msk [vmem:[#allocation2] sm:$0xff] %vm473_vm1, %v472_v9  ;;  %v501_v11 = vld [vmem:[#allocation13 + $0x58] sm:$0xff]  ;;  %v500_v12 = vld [vmem:[#allocation13 + $0x50] sm:$0xff]  ;;  %v499_v13 = vld [vmem:[#allocation13 + $0x48] sm:$0xff]  ;;  %vm487_vm4 = vcmask 654720   ;;  %s1429_s27 = smov 64  }
  0xa5   : > { %954 = vmatprep.subr.mxu0 %v1426_v5  ;;  %984 = vmatprep.mubr.msk.f32.mxu0 %vm1427_vm2, %v1426_v5  ;;  %v498_v14 = vld [vmem:[#allocation13 + $0x40] sm:$0xff]  ;;  %v497_v15 = vld [vmem:[#allocation13 + $0x38] sm:$0xff]  ;;  %v496_v16 = vld [vmem:[#allocation13 + $0x30] sm:$0xff]  ;;  %s1430_s21 = smov 32   ;;  %s1431_s6 = smov 96   ;;  %vm626_vm5 = vcmask 261120  }
  0xa6   : > { %955 = vmatpush3.msra.mxu0 %v504_v6  ;;  %995 = vmatprep.mubr.msk.f32.mxu1 %vm1427_vm2, %v1426_v5  ;;  %v495_v17 = vld [vmem:[#allocation13 + $0x28] sm:$0xff]  ;;  %v494_v18 = vld [vmem:[#allocation13 + $0x20] sm:$0xff]  ;;  %v493_v19 = vld [vmem:[#allocation13 + $0x18] sm:$0xff]  ;;  %s1432_s26 = smov [#allocation17]   ;;  %p1855_p12 = scmp.eq.s32.totalorder %s1511_s19, 7 }
  0xa7   : > { %v482_v7 = vld [vmem:[#allocation3] sm:$0xff]  ;;  %956 = vmatprep.subr.mxu0 %v1426_v5  ;;  %v492_v20 = vld [vmem:[#allocation13 + $0x10] sm:$0xff]  ;;  %v491_v21 = vld [vmem:[#allocation13 + $0x8] sm:$0xff]  ;;  %s735_s30 = sshll.u32 %s1432_s26, 4  ;;  %s736_s30 = int_to_ptr.vmem [resolvable:$true] %s735_s30 }
  0xa8   : > { %484 = vrot.lane.b32.xlu0 %v482_v7, %s1428_s12  ;;  %957 = vmatpush3.msra.mxu0 %v503_v8  ;;  %v490_v22 = vld [vmem:[#allocation13] sm:$0xff]  ;;  %v918_v26 = vld [vmem:[%s1813_s5] ss:$0 sm:$0xff]  ;;  %v590_v31 = vld [vmem:[#allocation4] sm:$0xff]  ;;  %s1282_s11 = scalar_lea.vmem %s736_s30, 128  ;;  %p1289_p8 = scmp.lt.s32.totalorder %s736_s30, %s736_s30 }
  0xa9   : > { %958 = vmatprep.subr.mxu0 %v1426_v5  ;;  %v615_v42 = vld [vmem:[#allocation14 + $0x18] sm:$0xff]  ;;  %v614_v43 = vld [vmem:[#allocation14 + $0x10] sm:$0xff]  ;;  %v613_v44 = vld [vmem:[#allocation14 + $0x8] sm:$0xff]  ;;  %p1283_p11 = scmp.ne.s32.totalorder %s736_s30, %s1282_s11  ;;  %p1290_p9 = scmp.lt.s32.totalorder %s1282_s11, %s1282_s11 }
  0xaa   : > { %959 = vmatpush3.msra.mxu0 %v502_v10  ;;  %988 = vmatpush3.msra.mxu1 %v615_v42  ;;  %v612_v45 = vld [vmem:[#allocation14] sm:$0xff] }
  0xab   : > { %960 = vmatprep.subr.mxu0 %v1426_v5  ;;  %989 = vmatprep.subr.mxu1 %v1426_v5  ;;  %p1284_p1 = pnand %p1283_p11, %p1855_p12  ;;  %p1291_p7 = por %p1290_p9, %p1289_p8 }
  0xac   : > { %961 = vmatpush3.msra.mxu0 %v501_v11  ;;  %990 = vmatpush3.msra.mxu1 %v614_v43 }
  0xad   : > { %962 = vmatprep.subr.mxu0 %v1426_v5  ;;  %991 = vmatprep.subr.mxu1 %v1426_v5  ;;  %p1285_p0 = pneg %p1284_p1 }
  0xae   : > { %963 = vmatpush3.msra.mxu0 %v500_v12  ;;  %992 = vmatpush3.msra.mxu1 %v613_v44 }
  0xaf   : > { %964 = vmatprep.subr.mxu0 %v1426_v5  ;;  %993 = vmatprep.subr.mxu1 %v1426_v5  ;;  %p1292_p6 = pnand %p1291_p7, %p1285_p0 }
  0xb0   : > { %965 = vmatpush3.msra.mxu0 %v499_v13  ;;  %994 = vmatpush3.msra.mxu1 %v612_v45 }
  0xb1   : > { %966 = vmatprep.subr.mxu0 %v1426_v5 }
  0xb2   : > { %967 = vmatpush3.msra.mxu0 %v498_v14 }
  0xb3   : > { %968 = vmatprep.subr.mxu0 %v1426_v5 }
  0xb4   : > { %969 = vmatpush3.msra.mxu0 %v497_v15 }
  0xb5   : > { %970 = vmatprep.subr.mxu0 %v1426_v5 }
  0xb6   : > { %971 = vmatpush3.msra.mxu0 %v496_v16 }
  0xb7   : > { %972 = vmatprep.subr.mxu0 %v1426_v5 }
  0xb8   : > { %973 = vmatpush3.msra.mxu0 %v495_v17 }
  0xb9   : > { %974 = vmatprep.subr.mxu0 %v1426_v5 }
  0xba   : > { %975 = vmatpush3.msra.mxu0 %v494_v18 }
  0xbb   : > { %976 = vmatprep.subr.mxu0 %v1426_v5 }
  0xbc   : > { %977 = vmatpush3.msra.mxu0 %v493_v19 }
  0xbd   : > { %978 = vmatprep.subr.mxu0 %v1426_v5 }
  0xbe   : > { %979 = vmatpush3.msra.mxu0 %v492_v20 }
  0xbf   : > { %980 = vmatprep.subr.mxu0 %v1426_v5 }
  0xc0   : > { %981 = vmatpush3.msra.mxu0 %v491_v21 }
  0xc1   : > { %982 = vmatprep.subr.mxu0 %v1426_v5 }
  0xc2   : > { %983 = vmatpush3.msra.mxu0 %v490_v22 }
 0x115   : > { %v478_v23 = vpop.permute.xlu0 %477 }
 0x116   : > { %481 = vst.msk [vmem:[#allocation2] sm:$0xff] %vm480_vm3, %v478_v23 }
 0x11a   : > { %v485_v24 = vpop.permute.xlu0 %484 }
 0x11b   : > { %488 = vst.msk [vmem:[#allocation2] sm:$0xff] %vm487_vm4, %v485_v24 }
 0x122   : > { %v489_v25 = vld [vmem:[#allocation2] sm:$0xff] }
 0x123   : > { %985 = vmatmul.mubr.f32.vlgmr.msra.gmra.mxu0 %v489_v25 }
 0x1e3   : > { %v579_v27 = vpop.f32.mrf.mxu0 }
 0x1e4   : > { %v580_v28 = vadd.f32 %v918_v26, %v579_v27 }
 0x1e5   : > { %v986_v29 = vpop.f32.mrf.mxu0 }
 0x1e6   : > { %1114 = vtanh.f32 %v580_v28  ;;  %v919_v32 = vmul.f32 -1.442695, %v580_v28 }
 0x1e8   : > { %1116 = vpow2.f32 %v919_v32 }
 0x1f3   : > { %v1115_v30 = vpop.eup %1114 }
 0x1f4   : > { %597 = vrot.lane.b32.xlu1 %v1115_v30, %s1429_s27 }
 0x1f5   : > { %v1117_v33 = vpop.eup %1116 }
 0x1f6   : > { %v586_v34 = vadd.f32 1.0, %v1117_v33 }
 0x1f8   : > { %592 = vrot.lane.b32.xlu1 %v590_v31, %s1430_s21  ;;  %1118 = vrcp.f32 %v586_v34 }
 0x205   : > { %v1119_v35 = vpop.eup %1118 }
 0x266   : > { %v598_v36 = vpop.permute.xlu1 %597 }
 0x267   : > { %v600_v37 = vmul.f32 %v1119_v35, %v598_v36 }
 0x269   : > { %602 = vrot.lane.b32.xlu0 %v600_v37, %s1430_s21 }
 0x26a   : > { %v593_v38 = vpop.permute.xlu1 %592 }
 0x26b   : > { %v595_v39 = vmul.f32 %v1119_v35, %v593_v38 }
 0x2db   : > { %v603_v40 = vpop.permute.xlu0 %602 }
 0x2dc   : > { %v605_v41 = vadd.f32 %v603_v40, %v595_v39 }
 0x2de   : > { %1120 = vtanh.f32 %v605_v41 }
 0x2eb   : > { %v1121_v46 = vpop.eup %1120 }
 0x2ec   : > { %608 = vrot.lane.b32.xlu1 %v1121_v46, %s1429_s27 }
 0x2f0   : > { %704 = vrot.lane.b32.xlu1 %v605_v41, %s1431_s6 }
 0x35e   : > { %v609_v47 = vpop.permute.xlu1 %608 }
 0x35f   : > { %v611_v48 = vmul.f32 %v1119_v35, %v609_v47 }
 0x361   : > { %624 = vrot.lane.b32.xlu0 %v611_v48, %s1430_s21 }
 0x362   : > { %v705_v49 = vpop.permute.xlu1 %704 }
 0x363   : > { %707 = vst.msk [vmem:[#allocation4] sm:$0xff] %vm626_vm5, %v705_v49  ;;  %709 = vst.msk [vmem:[#allocation19] sm:$0xff] %vm626_vm5, %v705_v49 }
 0x3d3   : > { %v625_v50 = vpop.permute.xlu0 %624 }
 0x3d4   : > { %702 = vst.msk [vmem:[#allocation3] sm:$0xff] %vm626_vm5, %v625_v50  ;;  %708 = vst.msk [vmem:[#allocation17] sm:$0xff] %vm626_vm5, %v625_v50  ;;  %996 = vmatmul.mubr.msk.f32.vlgmr.msra.gmra.mxu1 %vm626_vm5, %v625_v50 }
 0x3d5   : > { %1295 = shalt.err (!%p1292_p6)
}
 0x3d6   : > { %p1856_p10 = pmov %p1855_p12  ;;  %s1433_s2 = smov [#allocation19]  }
 0x3d7   : > { %s746_s20 = sshll.u32 %s1433_s2, 4  ;;  %s747_s20 = int_to_ptr.vmem [resolvable:$true] %s746_s20 }
 0x3d8   : > { %1020 = dma.vmem_to_hbm [thread:$0]  (%p1856_p10), %s736_s30, 128, %s1817_s9, [#allocation18]  }
 0x3d9   : > { %s1306_s28 = scalar_lea.vmem %s747_s20, 128  ;;  %p1857_p3 = pmov %p1856_p10 }
 0x3da   : > { %p1307_p13 = scmp.ne.s32.totalorder %s747_s20, %s1306_s28  ;;  %p1313_p5 = scmp.lt.s32.totalorder %s747_s20, %s747_s20 }
 0x3db   : > { %p1314_p11 = scmp.lt.s32.totalorder %s1306_s28, %s1306_s28 }
 0x3dc   : > { %p1308_p4 = pnand %p1307_p13, %p1857_p3 }
 0x3dd   : > { %p1315_p12 = por %p1314_p11, %p1313_p5 }
 0x3de   : > { %p1309_p2 = pneg %p1308_p4 }
 0x3e0   : > { %p1316_p1 = pnand %p1315_p12, %p1309_p2 }
 0x3e2   : > { %1319 = shalt.err (!%p1316_p1)
}
 0x3e3   : > { %p1858_p0 = pmov %p1857_p3  ;;  %v920_v51 = vld [vmem:[%s1815_s7] ss:$0 sm:$0xff]  ;;  %s923_s27 = sshll.u32 %s1511_s19, 7  ;;  %vm699_vm6 = vcmask 523264  }
 0x3e4   : > { %s724_s21 = sshll.u32 %s457_s17, 4  ;;  %s1766_s30 = scalar_lea.hbm %s1816_s8, %s923_s27  ;;  %s725_s21 = int_to_ptr.vmem [resolvable:$true] %s724_s21 }
 0x3e5   : > { %1022 = dma.vmem_to_hbm [thread:$0]  (%p1858_p0), %s747_s20, 128, %s1818_s10, [#allocation18]  }
 0x3e6   : > { %s711_s11 = scalar_lea.sflag [#allocation7], %s1679_s29  ;;  %s1330_s24 = scalar_lea.vmem %s725_s21, 128 }
 0x3e7   : > { %p1331_p8 = scmp.ne.s32.totalorder %s725_s21, %s1330_s24  ;;  %p1859_p9 = scmp.ne.s32.totalorder %s1843_s22, 0 }
 0x3e8   : > { %s1434_s3 = smov [#allocation16]  }
 0x3e9   : > { %p1332_p7 = pnand %p1331_p8, %p1859_p9  ;;  %s1334_s2 = sshll.u32 %s1434_s3, 4  ;;  %s1335_s2 = int_to_ptr.vmem [resolvable:$false] %s1334_s2 }
 0x3ea   : > { %s1336_s20 = scalar_lea.vmem %s1335_s2, 256  ;;  %p1337_p10 = scmp.lt.s32.totalorder %s725_s21, %s1335_s2 }
 0x3eb   : > { %p1333_p6 = pneg %p1332_p7  ;;  %p1338_p13 = scmp.lt.s32.totalorder %s1336_s20, %s1330_s24 }
 0x3ed   : > { %p1339_p3 = por %p1338_p13, %p1337_p10 }
 0x3ef   : > { %p1340_p4 = pnand %p1339_p3, %p1333_p6 }
 0x494   : > { %v695_v52 = vpop.f32.mrf.mxu1 }
 0x495   : > { %v696_v53 = vadd.f32 %v920_v51, %v695_v52 }
 0x496   : > { %v997_v54 = vpop.f32.mrf.mxu1 }
 0x497   : > { %700 = vst.msk [vmem:[%s457_s17] sm:$0xff] %vm699_vm6, %v696_v53 }
 0x498   : > { %1343 = shalt.err (!%p1340_p4)
}
 0x499   : > { %s1344_s15 = scalar_lea.hbm %s1766_s30, 128  ;;  %s1348_s28 = scalar_lea.hbm %s1816_s8, 1024 }
 0x49a   : > { %p1345_p2 = scmp.ne.s32.totalorder %s1766_s30, %s1344_s15  ;;  %p1349_p12 = scmp.lt.s32.totalorder %s1766_s30, %s1816_s8 }
 0x49b   : > { %p1350_p1 = scmp.lt.s32.totalorder %s1348_s28, %s1344_s15 }
 0x49c   : > { %p1346_p5 = pnand %p1345_p2, %p1859_p9 }
 0x49d   : > { %p1351_p0 = por %p1350_p1, %p1349_p12 }
 0x49e   : > { %p1347_p11 = pneg %p1346_p5 }
 0x4a0   : > { %p1352_p8 = pnand %p1351_p0, %p1347_p11 }
 0x4a2   : > { %1355 = shalt.err (!%p1352_p8)
}
 0x4a3   : > { %1018 = dma.vmem_to_hbm [thread:$0]  (%p1859_p9), %s725_s21, 128, %s1766_s30, %s711_s11  }
 0x4a4   : > { %p1860_p7 = scmp.eq.s32.totalorder %s1511_s19, 7 }
 0x4a6   : > { %1393 = dma.done.wait (%p1860_p7), [#allocation18], 256   ;;  %p1861_p6 = pmov %p1860_p7 }
 0x4a8   : > { %1395 = vsyncadd (%p1861_p6), [#allocation18], 4294967040 }
 0x4a9 PF: > { %p1065_p10 = scmp.ge.s32.totalorder %s1414_s16, 2  ;;  %s766_s4 = sand.u32 1, %s1402_s13  }
 0x4aa   : > { %p1862_p13 = scmp.ne.s32.totalorder %s1844_s23, 0  ;;  %s767_s18 = scalar_lea.sflag [#allocation7], %s766_s4 }
 0x4ac   : > { %p1049_p3 = pnand %p1065_p10, %p1862_p13 }
 0x4ae   : > { %p1050_p4 = pneg %p1049_p3 }
 0x4b0   : > { %1397 = dma.done.wait (%p1050_p4), %s767_s18, 128  }
 0x4b1   : > { %1399 = vsyncadd (%p1050_p4), %s767_s18, 4294967168  ;;  %s1863_s16 = sld [smem:[#allocation28_spill]]  ;;  %s1866_s13 = smov %s1406_s14 }
 0x4b2   : > { %s1864_s22 = sld [smem:[#allocation27_spill]] }
 0x4b3   : > { %s1865_s15 = sld [smem:[#allocation29_spill]] }
 0x4b7   : > { %p30_p9 = scmp.ge.s32.totalorder %s1863_s16, 10  }
 0x4b8   : > { %s1867_s14 = smov %s1864_s22 }
 0x4b9   :  { %32 = sbr.rel (!%p30_p9) target bundleno = 15 (0xf), region = 146 }
 0x4be   :  { %772 = vsyncpa [#allocation6], 1 }
 0x4bf   :  { %774 = vsyncpa [#allocation6 + $0x1], 1 }
 0x4c0   :  { %775 = vsyncpa [#allocation9], 1 }
 0x4c1   :  { %777 = vsyncpa [#allocation9 + $0x1], 1 }
 0x4c2   :  { %778 = vsyncpa [#allocation12], 1 }
 0x4c3   :  { %779 = vsyncpa [#allocation15], 1 }
 0x4c4   :  { %780 = vsyncpa [#allocation7], 1 }
 0x4c5   :  { %782 = vsyncpa [#allocation7 + $0x1], 1 }
 0x4c6   :  { %783 = vsyncpa [#allocation18], 1 }

</bundles_post_ra>
